<compile_context>
chip_gen: v7x
topology: tpu7x:2x2x1
jax: 0.10.0
libtpu: 0.0.40
codegen_flags: <defaults>
</compile_context>

<pallas_src>
import jax
import jax.numpy as jnp
from jax.experimental import pallas as pl
from jax.experimental.pallas import tpu as pltpu

_VMEM_LIMIT = 64 * 1024 * 1024


# --------------------------------- kernel ---------------------------------- #
def _rls_kernel(p_ref, r_row_ref, r_col_ref, oz_ref, oc_ref, ez_ref, ec_ref,
                p_out_ref, oz_out_ref, oc_out_ref, apr_ref):
    """One grid step = one (tm, N) row stripe of the rank-1 update of P.

    Grid step 0 additionally computes the gain row a*(P r)^T (stashed in the
    persistent VMEM scratch `apr_ref`) and both small weight updates.
    """
    j = pl.program_id(0)
    tm = p_out_ref.shape[0]

    @pl.when(j == 0)
    def _gain_and_weights():
        # Lane-dense Pr row via a single MXU GEMV (see symmetry note above).
        pr = jnp.dot(r_row_ref[...], p_ref[...],
                     preferred_element_type=jnp.float32)              # (1, N)
        rpr = jnp.sum(r_row_ref[...] * pr, axis=-1, keepdims=True)    # (1, 1)
        a = 1.0 / (1.0 + rpr)       # exact divide: the RLS gain is sensitive
        apr = a * pr                # fold the scalar into the row exactly once
        apr_ref[...] = apr
        # Weight updates: W -= outer(e, a*Pr)  -- VPU broadcast multiplies.
        oz_out_ref[...] = oz_ref[...] - ez_ref[...] * apr
        oc_out_ref[...] = oc_ref[...] - ec_ref[...] * apr

    # Rank-1 row-stripe update of P.  The stripe's exact column factor
    # Pr[rows] = P[rows, :] @ r is recomputed on the MXU (the stripe is
    # already resident in VMEM, so this hides under the writeback DMA).
    row0 = pl.multiple_of(j * tm, tm)
    p_stripe = p_ref[pl.ds(row0, tm), :]                               # (tm, N)
    pr_col = jnp.dot(p_stripe, r_col_ref[...],
                     preferred_element_type=jnp.float32)               # (tm, 1)
    p_out_ref[...] = p_stripe - pr_col * apr_ref[...]


# -------------------------------- wrapper ----------------------------------- #
def rls_step(P, o_z, o_c, r, error_z, error_c, *, block_rows=512):
    """One RLS update. Returns (new_P, new_o_z, new_o_c)."""
    N = P.shape[0]
    Dz = o_z.shape[0]
    Dc = o_c.shape[0]
    f32 = jnp.float32
    # TODO(synk): pad/mask to support N that is not a multiple of 128.
    assert N % 128 == 0, "this kernel requires in_num to be a multiple of 128"

    tm = min(block_rows, N)
    while N % tm != 0:
        tm //= 2
    assert tm % 8 == 0
    grid = (N // tm,)

    # Cheap O(N + D) layout plumbing (the O(N^2) P path is untouched).
    P = P.astype(f32)
    oz = o_z.astype(f32)
    oc = o_c.astype(f32)
    r_row = r.astype(f32).reshape(1, N)
    r_col = r.astype(f32).reshape(N, 1)
    ez = error_z.astype(f32).reshape(Dz, 1)
    ec = error_c.astype(f32).reshape(Dc, 1)

    new_P, new_oz, new_oc = pl.pallas_call(
        _rls_kernel,
        grid=grid,
        in_specs=[
            pl.BlockSpec((N, N), lambda j: (0, 0)),     # P (resident, aliased)
            pl.BlockSpec((1, N), lambda j: (0, 0)),     # r as a row
            pl.BlockSpec((N, 1), lambda j: (0, 0)),     # r as a column
            pl.BlockSpec((Dz, N), lambda j: (0, 0)),    # o_z (aliased)
            pl.BlockSpec((Dc, N), lambda j: (0, 0)),    # o_c (aliased)
            pl.BlockSpec((Dz, 1), lambda j: (0, 0)),    # error_z column
            pl.BlockSpec((Dc, 1), lambda j: (0, 0)),    # error_c column
        ],
        out_specs=(
            pl.BlockSpec((tm, N), lambda j: (j, 0)),    # P row stripe (streamed)
            pl.BlockSpec((Dz, N), lambda j: (0, 0)),    # new o_z (written once)
            pl.BlockSpec((Dc, N), lambda j: (0, 0)),    # new o_c (written once)
        ),
        out_shape=(
            jax.ShapeDtypeStruct((N, N), f32),
            jax.ShapeDtypeStruct((Dz, N), f32),
            jax.ShapeDtypeStruct((Dc, N), f32),
        ),
        scratch_shapes=[pltpu.VMEM((1, N), f32)],       # a * Pr row (persists)
        input_output_aliases={0: 0, 3: 1, 4: 2},        # P, o_z, o_c in place
        compiler_params=pltpu.CompilerParams(
            dimension_semantics=("arbitrary",),
            vmem_limit_bytes=_VMEM_LIMIT),
    )(P, r_row, r_col, oz, oc, ez, ec)

    return new_P, new_oz, new_oc


# -------------------------------- reference --------------------------------- #
def rls_reference(P, o_z, o_c, r, error_z, error_c):
    Pr = P @ r
    a = 1.0 / (1.0 + jnp.dot(r, Pr))
    new_P = P - a * jnp.outer(Pr, Pr)
    new_oz = o_z - a * jnp.outer(error_z, Pr)
    new_oc = o_c - a * jnp.outer(error_c, Pr)
    return new_P, new_oz, new_oc


if __name__ == "__main__":
    # Module hyper-params: in_num = N reservoir units, alpha = 1.0
    N, Dz, Dc = 128, 8, 8
    alpha = 1.0

    key = jax.random.PRNGKey(0)
    k1, k2, k3, k4, k5 = jax.random.split(key, 5)

    P = alpha * jnp.eye(N, dtype=jnp.float32)            # module init: alpha * I
    o_z = 0.1 * jax.random.normal(k1, (Dz, N), dtype=jnp.float32)
    o_c = 0.1 * jax.random.normal(k2, (Dc, N), dtype=jnp.float32)
    r = jax.random.normal(k3, (N,), dtype=jnp.float32)
    error_z = jax.random.normal(k4, (Dz,), dtype=jnp.float32)
    error_c = jax.random.normal(k5, (Dc,), dtype=jnp.float32)

    # Reference first (the state tensors are donated to the kernel call below).
    ref_P, ref_oz, ref_oc = rls_reference(P, o_z, o_c, r, error_z, error_c)
    jax.block_until_ready((ref_P, ref_oz, ref_oc))

    rls_step_jit = jax.jit(rls_step, donate_argnums=(0, 1, 2))
    new_P, new_oz, new_oc = rls_step_jit(P, o_z, o_c, r, error_z, error_c)
    jax.block_until_ready((new_P, new_oz, new_oc))

    assert jnp.allclose(new_P, ref_P, atol=1e-5, rtol=1e-5)
    assert jnp.allclose(new_oz, ref_oz, atol=1e-5, rtol=1e-5)
    assert jnp.allclose(new_oc, ref_oc, atol=1e-5, rtol=1e-5)

    print("KERNEL_OK")
</pallas_src>

<mosaic_0001>
module attributes {stable_mosaic.version = 11 : i64} {
  func.func @_rls_kernel(%arg0: i32, %arg1: memref<128x128xf32, #tpu.memory_space<vmem>>, %arg2: memref<1x128xf32, #tpu.memory_space<vmem>>, %arg3: memref<128x1xf32, #tpu.memory_space<vmem>>, %arg4: memref<8x128xf32, #tpu.memory_space<vmem>>, %arg5: memref<8x128xf32, #tpu.memory_space<vmem>>, %arg6: memref<8x1xf32, #tpu.memory_space<vmem>>, %arg7: memref<8x1xf32, #tpu.memory_space<vmem>>, %arg8: memref<128x128xf32, #tpu.memory_space<vmem>>, %arg9: memref<8x128xf32, #tpu.memory_space<vmem>>, %arg10: memref<8x128xf32, #tpu.memory_space<vmem>>, %arg11: memref<1x128xf32, #tpu.memory_space<vmem>>) attributes {dimension_semantics = [#tpu.dimension_semantics<arbitrary>], iteration_bounds = array<i64: 1>, scalar_prefetch = 0 : i64, scratch_operands = 1 : i64, tpu.core_type = #tpu.core_type<tc>, window_params = [{pipeline_mode = #tpu.pipeline_mode<synchronous>, transform_indices = @transform_0, window_bounds = array<i64: 128, 128>}, {pipeline_mode = #tpu.pipeline_mode<synchronous>, transform_indices = @transform_1, window_bounds = array<i64: 1, 128>}, {pipeline_mode = #tpu.pipeline_mode<synchronous>, transform_indices = @transform_2, window_bounds = array<i64: 128, 1>}, {pipeline_mode = #tpu.pipeline_mode<synchronous>, transform_indices = @transform_3, window_bounds = array<i64: 8, 128>}, {pipeline_mode = #tpu.pipeline_mode<synchronous>, transform_indices = @transform_4, window_bounds = array<i64: 8, 128>}, {pipeline_mode = #tpu.pipeline_mode<synchronous>, transform_indices = @transform_5, window_bounds = array<i64: 8, 1>}, {pipeline_mode = #tpu.pipeline_mode<synchronous>, transform_indices = @transform_6, window_bounds = array<i64: 8, 1>}, {transform_indices = @transform_7, window_bounds = array<i64: 128, 128>}, {pipeline_mode = #tpu.pipeline_mode<synchronous>, transform_indices = @transform_8, window_bounds = array<i64: 8, 128>}, {pipeline_mode = #tpu.pipeline_mode<synchronous>, transform_indices = @transform_9, window_bounds = array<i64: 8, 128>}]} {
    %c0_i32 = arith.constant 0 : i32
    %0 = arith.cmpi eq, %arg0, %c0_i32 : i32
    %1 = arith.extui %0 : i1 to i32
    %c0_i32_0 = arith.constant 0 : i32
    %2 = arith.cmpi ne, %1, %c0_i32_0 : i32
    scf.if %2 {
      %c0_7 = arith.constant 0 : index
      %c0_8 = arith.constant 0 : index
      %15 = vector.load %arg2[%c0_7, %c0_8] : memref<1x128xf32, #tpu.memory_space<vmem>>, vector<1x128xf32>
      %c0_9 = arith.constant 0 : index
      %c0_10 = arith.constant 0 : index
      %16 = vector.load %arg1[%c0_9, %c0_10] : memref<128x128xf32, #tpu.memory_space<vmem>>, vector<128x128xf32>
      %cst_11 = arith.constant dense<0.000000e+00> : vector<1x128xf32>
      %17 = tpu.matmul %15, %16, %cst_11 {dimension_numbers = #tpu.dot_dimension_numbers<[1], [0], [0], [1], [0, 0, 1, 1], [], []>} : vector<1x128xf32>, vector<128x128xf32>, vector<1x128xf32> -> vector<1x128xf32>
      %c0_12 = arith.constant 0 : index
      %c0_13 = arith.constant 0 : index
      %18 = vector.load %arg2[%c0_12, %c0_13] : memref<1x128xf32, #tpu.memory_space<vmem>>, vector<1x128xf32>
      %19 = arith.mulf %18, %17 : vector<1x128xf32>
      %cst_14 = arith.constant dense<0.000000e+00> : vector<1xf32>
      %20 = vector.multi_reduction <add>, %19, %cst_14 [1] : vector<1x128xf32> to vector<1xf32>
      %21 = vector.shape_cast %20 : vector<1xf32> to vector<1x1xf32>
      %cst_15 = arith.constant 1.000000e+00 : f32
      %22 = vector.broadcast %cst_15 : f32 to vector<1x1xf32>
      %23 = arith.addf %22, %21 : vector<1x1xf32>
      %cst_16 = arith.constant 1.000000e+00 : f32
      %24 = vector.broadcast %cst_16 : f32 to vector<1x1xf32>
      %25 = arith.divf %24, %23 : vector<1x1xf32>
      %26 = vector.broadcast %25 : vector<1x1xf32> to vector<1x128xf32>
      %27 = arith.mulf %26, %17 : vector<1x128xf32>
      %c0_17 = arith.constant 0 : index
      %c0_18 = arith.constant 0 : index
      %28 = vector.load %arg11[%c0_17, %c0_18] : memref<1x128xf32, #tpu.memory_space<vmem>>, vector<1x128xf32>
      tpu.vector_store %arg11[%c0_17, %c0_18], %27 {strides = array<i32>} : memref<1x128xf32, #tpu.memory_space<vmem>>, vector<1x128xf32>,
      %c0_19 = arith.constant 0 : index
      %c0_20 = arith.constant 0 : index
      %29 = vector.load %arg4[%c0_19, %c0_20] : memref<8x128xf32, #tpu.memory_space<vmem>>, vector<8x128xf32>
      %c0_21 = arith.constant 0 : index
      %c0_22 = arith.constant 0 : index
      %30 = vector.load %arg6[%c0_21, %c0_22] : memref<8x1xf32, #tpu.memory_space<vmem>>, vector<8x1xf32>
      %31 = vector.broadcast %30 : vector<8x1xf32> to vector<8x128xf32>
      %32 = vector.broadcast %27 : vector<1x128xf32> to vector<8x128xf32>
      %33 = arith.mulf %31, %32 : vector<8x128xf32>
      %34 = arith.subf %29, %33 : vector<8x128xf32>
      %c0_23 = arith.constant 0 : index
      %c0_24 = arith.constant 0 : index
      %35 = vector.load %arg9[%c0_23, %c0_24] : memref<8x128xf32, #tpu.memory_space<vmem>>, vector<8x128xf32>
      tpu.vector_store %arg9[%c0_23, %c0_24], %34 {strides = array<i32>} : memref<8x128xf32, #tpu.memory_space<vmem>>, vector<8x128xf32>,
      %c0_25 = arith.constant 0 : index
      %c0_26 = arith.constant 0 : index
      %36 = vector.load %arg5[%c0_25, %c0_26] : memref<8x128xf32, #tpu.memory_space<vmem>>, vector<8x128xf32>
      %c0_27 = arith.constant 0 : index
      %c0_28 = arith.constant 0 : index
      %37 = vector.load %arg7[%c0_27, %c0_28] : memref<8x1xf32, #tpu.memory_space<vmem>>, vector<8x1xf32>
      %38 = vector.broadcast %37 : vector<8x1xf32> to vector<8x128xf32>
      %39 = vector.broadcast %27 : vector<1x128xf32> to vector<8x128xf32>
      %40 = arith.mulf %38, %39 : vector<8x128xf32>
      %41 = arith.subf %36, %40 : vector<8x128xf32>
      %c0_29 = arith.constant 0 : index
      %c0_30 = arith.constant 0 : index
      %42 = vector.load %arg10[%c0_29, %c0_30] : memref<8x128xf32, #tpu.memory_space<vmem>>, vector<8x128xf32>
      tpu.vector_store %arg10[%c0_29, %c0_30], %41 {strides = array<i32>} : memref<8x128xf32, #tpu.memory_space<vmem>>, vector<8x128xf32>,
    } else {
    }
    %c128_i32 = arith.constant 128 : i32
    %3 = arith.muli %arg0, %c128_i32 : i32
    %4 = tpu.assume_multiple %3, 128 : i32
    %5 = arith.index_cast %4 : i32 to index
    %c0 = arith.constant 0 : index
    %6 = vector.load %arg1[%5, %c0] : memref<128x128xf32, #tpu.memory_space<vmem>>, vector<128x128xf32>
    %c0_1 = arith.constant 0 : index
    %c0_2 = arith.constant 0 : index
    %7 = vector.load %arg3[%c0_1, %c0_2] : memref<128x1xf32, #tpu.memory_space<vmem>>, vector<128x1xf32>
    %cst = arith.constant dense<0.000000e+00> : vector<128x1xf32>
    %8 = tpu.matmul %6, %7, %cst {dimension_numbers = #tpu.dot_dimension_numbers<[1], [0], [0], [1], [0, 0, 1, 1], [], []>} : vector<128x128xf32>, vector<128x1xf32>, vector<128x1xf32> -> vector<128x1xf32>
    %c0_3 = arith.constant 0 : index
    %c0_4 = arith.constant 0 : index
    %9 = vector.load %arg11[%c0_3, %c0_4] : memref<1x128xf32, #tpu.memory_space<vmem>>, vector<1x128xf32>
    %10 = vector.broadcast %8 : vector<128x1xf32> to vector<128x128xf32>
    %11 = vector.broadcast %9 : vector<1x128xf32> to vector<128x128xf32>
    %12 = arith.mulf %10, %11 : vector<128x128xf32>
    %13 = arith.subf %6, %12 : vector<128x128xf32>
    %c0_5 = arith.constant 0 : index
    %c0_6 = arith.constant 0 : index
    %14 = vector.load %arg8[%c0_5, %c0_6] : memref<128x128xf32, #tpu.memory_space<vmem>>, vector<128x128xf32>
    tpu.vector_store %arg8[%c0_5, %c0_6], %13 {strides = array<i32>} : memref<128x128xf32, #tpu.memory_space<vmem>>, vector<128x128xf32>,
    return
  }
  func.func @transform_0(%arg0: i32) -> (i32, i32) {
    %c0_i32 = arith.constant 0 : i32
    %c0_i32_0 = arith.constant 0 : i32
    %c0_i32_1 = arith.constant 0 : i32
    return %c0_i32, %c0_i32_0 : i32, i32
  }
  func.func @transform_1(%arg0: i32) -> (i32, i32) {
    %c0_i32 = arith.constant 0 : i32
    %c0_i32_0 = arith.constant 0 : i32
    %c0_i32_1 = arith.constant 0 : i32
    return %c0_i32, %c0_i32_0 : i32, i32
  }
  func.func @transform_2(%arg0: i32) -> (i32, i32) {
    %c0_i32 = arith.constant 0 : i32
    %c0_i32_0 = arith.constant 0 : i32
    %c0_i32_1 = arith.constant 0 : i32
    return %c0_i32, %c0_i32_0 : i32, i32
  }
  func.func @transform_3(%arg0: i32) -> (i32, i32) {
    %c0_i32 = arith.constant 0 : i32
    %c0_i32_0 = arith.constant 0 : i32
    %c0_i32_1 = arith.constant 0 : i32
    return %c0_i32, %c0_i32_0 : i32, i32
  }
  func.func @transform_4(%arg0: i32) -> (i32, i32) {
    %c0_i32 = arith.constant 0 : i32
    %c0_i32_0 = arith.constant 0 : i32
    %c0_i32_1 = arith.constant 0 : i32
    return %c0_i32, %c0_i32_0 : i32, i32
  }
  func.func @transform_5(%arg0: i32) -> (i32, i32) {
    %c0_i32 = arith.constant 0 : i32
    %c0_i32_0 = arith.constant 0 : i32
    %c0_i32_1 = arith.constant 0 : i32
    return %c0_i32, %c0_i32_0 : i32, i32
  }
  func.func @transform_6(%arg0: i32) -> (i32, i32) {
    %c0_i32 = arith.constant 0 : i32
    %c0_i32_0 = arith.constant 0 : i32
    %c0_i32_1 = arith.constant 0 : i32
    return %c0_i32, %c0_i32_0 : i32, i32
  }
  func.func @transform_7(%arg0: i32) -> (i32, i32) {
    %c0_i32 = arith.constant 0 : i32
    %c0_i32_0 = arith.constant 0 : i32
    return %arg0, %c0_i32 : i32, i32
  }
  func.func @transform_8(%arg0: i32) -> (i32, i32) {
    %c0_i32 = arith.constant 0 : i32
    %c0_i32_0 = arith.constant 0 : i32
    %c0_i32_1 = arith.constant 0 : i32
    return %c0_i32, %c0_i32_0 : i32, i32
  }
  func.func @transform_9(%arg0: i32) -> (i32, i32) {
    %c0_i32 = arith.constant 0 : i32
    %c0_i32_0 = arith.constant 0 : i32
    %c0_i32_1 = arith.constant 0 : i32
    return %c0_i32, %c0_i32_0 : i32, i32
  }
}

</mosaic_0001>

<bundles_post_ra>
// kernel: rls_step.1
= control target key start
LH: loop header
LB: loop body
LE: loop exit
PB: predicated region body
PF: predicated region fallthrough
CT: control target
= control target key end

     0   :  { %15 = vsyncpa [#allocation4], 0  ;;  %s1381_s0 = inlined_call_operand.hbm [shape: f32[128,128], index: 0, kind: input, shape index: {}, may-alias: {0,7}]   ;;  %s1382_s1 = inlined_call_operand.hbm [shape: f32[1,128], index: 1, kind: input, shape index: {}]   ;;  %s1383_s2 = inlined_call_operand.hbm [shape: f32[128,1], index: 2, kind: input, shape index: {}]   ;;  %s1384_s3 = inlined_call_operand.hbm [shape: f32[8,128], index: 3, kind: input, shape index: {}, may-alias: {3,8}]   ;;  %s1385_s4 = inlined_call_operand.hbm [shape: f32[8,128], index: 4, kind: input, shape index: {}, may-alias: {4,9}]   ;;  %s1386_s5 = inlined_call_operand.hbm [shape: f32[8,1], index: 5, kind: input, shape index: {}]   ;;  %s1387_s6 = inlined_call_operand.hbm [shape: f32[8,1], index: 6, kind: input, shape index: {}]   ;;  %s1388_s7 = inlined_call_operand.hbm [shape: f32[128,128], index: 7, kind: output, shape index: {0}, may-alias: {0,7}]   ;;  %s1389_s8 = inlined_call_operand.hbm [shape: f32[8,128], index: 8, kind: output, shape index: {1}, may-alias: {3,8}]   ;;  %s1390_s9 = inlined_call_operand.hbm [shape: f32[8,128], index: 9, kind: output, shape index: {2}, may-alias: {4,9}]  }
   0x1   :  { %16 = vsyncpa [#allocation7], 0 }
   0x2   :  { %17 = vsyncpa [#allocation10], 0 }
   0x3   :  { %18 = vsyncpa [#allocation13], 0 }
   0x4   :  { %19 = vsyncpa [#allocation5], 0 }
   0x5   :  { %20 = vsyncpa [#allocation17], 0  ;;  %s1051_s30 = smov [#allocation6]   ;;  %s1052_s11 = smov [#allocation9]  }
   0x6   :  { %s39_s10 = sshll.u32 %s1051_s30, 4  ;;  %s61_s12 = sshll.u32 %s1052_s11, 4  ;;  %s40_s10 = int_to_ptr.vmem [resolvable:$true] %s39_s10  ;;  %s62_s12 = int_to_ptr.vmem [resolvable:$true] %s61_s12 }
   0x7   :  { %s819_s15 = scalar_lea.hbm %s1382_s1, 16 }
   0x8   :  { %p820_p0 = scmp.ne.s32.totalorder %s1382_s1, %s819_s15  ;;  %p823_p1 = scmp.lt.u32.totalorder %s819_s15, %s1382_s1 }
   0xa   :  { %p825_p2 = pnand %p823_p1, %p820_p0 }
   0xc   :  { %828 = shalt.err (!%p825_p2)
}
   0xd   :  { %s829_s20 = scalar_lea.vmem %s40_s10, 16  ;;  %s833_s21 = scalar_lea.vmem %s40_s10, 32 }
   0xe   :  { %p830_p3 = scmp.ne.s32.totalorder %s40_s10, %s829_s20  ;;  %p834_p4 = scmp.lt.s32.totalorder %s40_s10, %s40_s10 }
   0xf   :  { %p835_p5 = scmp.lt.s32.totalorder %s833_s21, %s829_s20 }
  0x11   :  { %p836_p6 = por %p835_p5, %p834_p4 }
  0x13   :  { %p837_p7 = pnand %p836_p6, %p830_p3 }
  0x15   :  { %840 = shalt.err (!%p837_p7)
}
  0x16   :  { %42 = dma.hbm_to_vmem [thread:$0]  %s1382_s1, 16, %s40_s10, [#allocation7]  }
  0x17   :  { %s841_s26 = scalar_lea.hbm %s1384_s3, 128 }
  0x18   :  { %p842_p8 = scmp.ne.s32.totalorder %s1384_s3, %s841_s26  ;;  %p845_p9 = scmp.lt.u32.totalorder %s841_s26, %s1384_s3 }
  0x1a   :  { %p847_p10 = pnand %p845_p9, %p842_p8 }
  0x1c   :  { %850 = shalt.err (!%p847_p10)
}
  0x1d   :  { %s851_s11 = scalar_lea.vmem %s62_s12, 128  ;;  %p856_p12 = scmp.lt.s32.totalorder %s62_s12, %s62_s12 }
  0x1e   :  { %p852_p11 = scmp.ne.s32.totalorder %s62_s12, %s851_s11  ;;  %p857_p13 = scmp.lt.s32.totalorder %s851_s11, %s851_s11 }
  0x20   :  { %p858_p0 = por %p857_p13, %p856_p12 }
  0x22   :  { %p859_p1 = pnand %p858_p0, %p852_p11 }
  0x24   :  { %862 = shalt.err (!%p859_p1)
}
  0x25   :  { %64 = dma.hbm_to_vmem [thread:$0]  %s1384_s3, 128, %s62_s12, [#allocation10]  }
  0x26   :  { %s1053_s13 = smov [#allocation12]   ;;  %s1054_s15 = smov [#allocation3]  }
  0x27   :  { %s81_s14 = sshll.u32 %s1053_s13, 4  ;;  %s26_s16 = sshll.u32 %s1054_s15, 4  ;;  %s82_s14 = int_to_ptr.vmem [resolvable:$true] %s81_s14  ;;  %s1141_s16 = int_to_ptr.vmem [resolvable:$true] %s26_s16 }
  0x28   :  { %s863_s19 = scalar_lea.hbm %s1386_s5, 128 }
  0x29   :  { %p864_p2 = scmp.ne.s32.totalorder %s1386_s5, %s863_s19  ;;  %p867_p3 = scmp.lt.u32.totalorder %s863_s19, %s1386_s5 }
  0x2b   :  { %p869_p4 = pnand %p867_p3, %p864_p2 }
  0x2d   :  { %872 = shalt.err (!%p869_p4)
}
  0x2e   :  { %s873_s3 = scalar_lea.vmem %s82_s14, 128  ;;  %p878_p6 = scmp.lt.s32.totalorder %s82_s14, %s82_s14 }
  0x2f   :  { %p874_p5 = scmp.ne.s32.totalorder %s82_s14, %s873_s3  ;;  %p879_p7 = scmp.lt.s32.totalorder %s873_s3, %s873_s3 }
  0x31   :  { %p880_p8 = por %p879_p7, %p878_p6 }
  0x33   :  { %p881_p9 = pnand %p880_p8, %p874_p5 }
  0x35   :  { %884 = shalt.err (!%p881_p9)
}
  0x36   :  { %84 = dma.hbm_to_vmem [thread:$0]  %s1386_s5, 128, %s82_s14, [#allocation13]  }
  0x37   :  { %s885_s27 = scalar_lea.hbm %s1381_s0, 2048 }
  0x38   :  { %p886_p10 = scmp.ne.s32.totalorder %s1381_s0, %s885_s27  ;;  %p889_p11 = scmp.lt.u32.totalorder %s885_s27, %s1381_s0 }
  0x3a   :  { %p891_p12 = pnand %p889_p11, %p886_p10 }
  0x3c   :  { %894 = shalt.err (!%p891_p12)
}
  0x3d   :  { %s895_s1 = scalar_lea.vmem %s1141_s16, 2048  ;;  %p900_p0 = scmp.lt.s32.totalorder %s1141_s16, %s1141_s16 }
  0x3e   :  { %p896_p13 = scmp.ne.s32.totalorder %s1141_s16, %s895_s1  ;;  %p901_p1 = scmp.lt.s32.totalorder %s895_s1, %s895_s1 }
  0x40   :  { %p902_p2 = por %p901_p1, %p900_p0 }
  0x42   :  { %p903_p3 = pnand %p902_p2, %p896_p13 }
  0x44   :  { %906 = shalt.err (!%p903_p3)
}
  0x45   :  { %s1055_s5 = smov 128   ;;  %s1056_s10 = smov 8  }
  0x46   :  { %32 = dma.hbm_to_vmem [thread:$0]  %s1381_s0, 2048, %s1141_s16, [#allocation4], %s1055_s5, %s1055_s5, %s1056_s10  }
  0x47   :  { %s1057_s15 = smov [#allocation8]   ;;  %s1058_s18 = smov [#allocation11]  }
  0x48   :  { %s48_s17 = sshll.u32 %s1057_s15, 4  ;;  %s71_s19 = sshll.u32 %s1058_s18, 4  ;;  %s49_s17 = int_to_ptr.vmem [resolvable:$true] %s48_s17  ;;  %s72_s19 = int_to_ptr.vmem [resolvable:$true] %s71_s19 }
  0x49   :  { %s907_s22 = scalar_lea.hbm %s1383_s2, 2048 }
  0x4a   :  { %p908_p4 = scmp.ne.s32.totalorder %s1383_s2, %s907_s22  ;;  %p911_p5 = scmp.lt.u32.totalorder %s907_s22, %s1383_s2 }
  0x4c   :  { %p913_p6 = pnand %p911_p5, %p908_p4 }
  0x4e   :  { %916 = shalt.err (!%p913_p6)
}
  0x4f   :  { %s917_s0 = scalar_lea.vmem %s49_s17, 2048  ;;  %p922_p8 = scmp.lt.s32.totalorder %s49_s17, %s49_s17 }
  0x50   :  { %p918_p7 = scmp.ne.s32.totalorder %s49_s17, %s917_s0  ;;  %p923_p9 = scmp.lt.s32.totalorder %s917_s0, %s917_s0 }
  0x52   :  { %p924_p10 = por %p923_p9, %p922_p8 }
  0x54   :  { %p925_p11 = pnand %p924_p10, %p918_p7 }
  0x56   :  { %928 = shalt.err (!%p925_p11)
}
  0x57   :  { %54 = dma.hbm_to_vmem [thread:$0]  %s1383_s2, 2048, %s49_s17, [#allocation7], %s1055_s5, %s1055_s5, %s1056_s10  }
  0x58   :  { %s929_s28 = scalar_lea.hbm %s1385_s4, 128 }
  0x59   :  { %p930_p12 = scmp.ne.s32.totalorder %s1385_s4, %s929_s28  ;;  %p933_p13 = scmp.lt.u32.totalorder %s929_s28, %s1385_s4 }
  0x5b   :  { %p935_p0 = pnand %p933_p13, %p930_p12 }
  0x5d   :  { %938 = shalt.err (!%p935_p0)
}
  0x5e   :  { %s939_s13 = scalar_lea.vmem %s72_s19, 128  ;;  %p944_p2 = scmp.lt.s32.totalorder %s72_s19, %s72_s19 }
  0x5f   :  { %p940_p1 = scmp.ne.s32.totalorder %s72_s19, %s939_s13  ;;  %p945_p3 = scmp.lt.s32.totalorder %s939_s13, %s939_s13 }
  0x61   :  { %p946_p4 = por %p945_p3, %p944_p2 }
  0x63   :  { %p947_p5 = pnand %p946_p4, %p940_p1 }
  0x65   :  { %950 = shalt.err (!%p947_p5)
}
  0x66   :  { %74 = dma.hbm_to_vmem [thread:$0]  %s1385_s4, 128, %s72_s19, [#allocation10]  }
  0x67   :  { %s1059_s15 = smov [#allocation14]   ;;  %s951_s21 = scalar_lea.hbm %s1387_s6, 128 }
  0x68   :  { %s91_s17 = sshll.u32 %s1059_s15, 4  ;;  %p952_p6 = scmp.ne.s32.totalorder %s1387_s6, %s951_s21  ;;  %s92_s17 = int_to_ptr.vmem [resolvable:$true] %s91_s17 }
  0x69   :  { %p955_p7 = scmp.lt.u32.totalorder %s951_s21, %s1387_s6 }
  0x6b   :  { %p957_p8 = pnand %p955_p7, %p952_p6 }
  0x6d   :  { %960 = shalt.err (!%p957_p8)
}
  0x6e   :  { %s961_s24 = scalar_lea.vmem %s92_s17, 128  ;;  %p966_p10 = scmp.lt.s32.totalorder %s92_s17, %s92_s17 }
  0x6f   :  { %p962_p9 = scmp.ne.s32.totalorder %s92_s17, %s961_s24  ;;  %p967_p11 = scmp.lt.s32.totalorder %s961_s24, %s961_s24 }
  0x71   :  { %p968_p12 = por %p967_p11, %p966_p10 }
  0x73   :  { %p969_p13 = pnand %p968_p12, %p962_p9 }
  0x75   :  { %972 = shalt.err (!%p969_p13)
}
  0x76   :  { %94 = dma.hbm_to_vmem [thread:$0]  %s1387_s6, 128, %s92_s17, [#allocation13]  }
  0x77   :  { %1039 = dma.done.wait [#allocation4], 2048  }
  0x78   :  { %1040 = vsyncadd [#allocation4], 4294965248 }
  0x79   :  { %1041 = dma.done.wait [#allocation7], 2064  }
  0x7a   :  { %1042 = vsyncadd [#allocation7], 4294965232 }
  0x7b   :  { %1043 = dma.done.wait [#allocation10], 256  }
  0x7c   :  { %1044 = vsyncadd [#allocation10], 4294967040 }
  0x7d   :  { %1045 = dma.done.wait [#allocation13], 256  }
  0x7e   :  { %1046 = vsyncadd [#allocation13], 4294967040  ;;  %v1060_v0 = vmov 0.0|0.0   ;;  %vm1061_vm0 = vmmov 0   ;;  %v1062_v1 = vmov 0.0   ;;  %v1063_v2 = vmov 0  }
  0x7f   :  { %743 = vmatprep.subr.bf16.mxu0 %v1060_v0  ;;  %684 = vmatprep.mubr.msk.f32.mxu0 %vm1061_vm0, %v1062_v1  ;;  %v1215_v3 = vld [vmem:[#allocation3] sm:$0xff]  ;;  %v1217_v4 = vld [vmem:[#allocation3 + $0x8] sm:$0xff]  ;;  %v1221_v8 = vld [vmem:[#allocation3 + $0x10] sm:$0xff]  ;;  %vm208_vm1 = vcmask 1040384   ;;  %s1064_s6 = smov [#allocation16]   ;;  %s1065_s16 = smov [#allocation18]  }
  0x80   :  { %815 = vset.pattern.permute.xlu0 %v1063_v2  ;;  %816 = vset.pattern.permute.xlu1 %v1063_v2  ;;  %v259_v5 = vld [vmem:[#allocation8] sm:$0xff]  ;;  %v744_v6 = vpack.c.bf16 %v1217_v4, %v1215_v3  ;;  %v260_v7 = vld [vmem:[#allocation8 + $0x8] sm:$0xff]  ;;  %v1223_v9 = vld [vmem:[#allocation3 + $0x18] sm:$0xff]  ;;  %s573_s0 = sshll.u32 %s1064_s6, 4  ;;  %s583_s25 = sshll.u32 %s1065_s16, 4  ;;  %s574_s0 = int_to_ptr.vmem [resolvable:$true] %s573_s0  ;;  %s1296_s25 = int_to_ptr.vmem [resolvable:$true] %s583_s25 }
  0x81   :  { %719 = vmatprep.mubr.f32.mxu1 %v1215_v3  ;;  %v767_v10 = vpack.c.bf16 %v260_v7, %v259_v5  ;;  %v261_v11 = vld [vmem:[#allocation8 + $0x10] sm:$0xff]  ;;  %v262_v12 = vld [vmem:[#allocation8 + $0x18] sm:$0xff]  ;;  %v747_v13 = vpack.c.bf16 %v1223_v9, %v1221_v8  ;;  %v263_v15 = vld [vmem:[#allocation8 + $0x20] sm:$0xff]  ;;  %s973_s26 = scalar_lea.vmem %s574_s0, 128  ;;  %p978_p1 = scmp.lt.s32.totalorder %s574_s0, %s574_s0 }
  0x82   :  { %745 = vmatpush3.bf16.msra.mxu0 %v744_v6  ;;  %v771_v14 = vpack.c.bf16 %v262_v12, %v261_v11  ;;  %v264_v16 = vld [vmem:[#allocation8 + $0x28] sm:$0xff]  ;;  %v1229_v17 = vld [vmem:[#allocation3 + $0x20] sm:$0xff]  ;;  %v265_v21 = vld [vmem:[#allocation8 + $0x30] sm:$0xff]  ;;  %p974_p0 = scmp.ne.s32.totalorder %s574_s0, %s973_s26  ;;  %p979_p2 = scmp.lt.s32.totalorder %s973_s26, %s973_s26 }
  0x83   :  { %768 = vmatprep.subr.bf16.mxu1 %v767_v10  ;;  %746 = vmatprep.subr.bf16.mxu0 %v1060_v0  ;;  %v1231_v18 = vld [vmem:[#allocation3 + $0x28] sm:$0xff]  ;;  %v775_v19 = vpack.c.bf16 %v264_v16, %v263_v15  ;;  %v266_v22 = vld [vmem:[#allocation8 + $0x38] sm:$0xff]  ;;  %v1236_v23 = vld [vmem:[#allocation3 + $0x30] sm:$0xff] }
  0x84   :  { %770 = vmatpush3.bf16.msra.mxu1 %v767_v10  ;;  %v750_v20 = vpack.c.bf16 %v1231_v18, %v1229_v17  ;;  %v1238_v24 = vld [vmem:[#allocation3 + $0x38] sm:$0xff]  ;;  %v779_v25 = vpack.c.bf16 %v266_v22, %v265_v21  ;;  %v267_v26 = vld [vmem:[#allocation8 + $0x40] sm:$0xff]  ;;  %v268_v28 = vld [vmem:[#allocation8 + $0x48] sm:$0xff]  ;;  %p980_p3 = por %p979_p2, %p978_p1 }
  0x85   :  { %772 = vmatprep.subr.bf16.mxu1 %v771_v14  ;;  %v753_v27 = vpack.c.bf16 %v1238_v24, %v1236_v23  ;;  %v218_v29 = vld [vmem:[#allocation12] sm:$0xff]  ;;  %v232_v30 = vld [vmem:[#allocation14] sm:$0xff]  ;;  %v1245_v32 = vld [vmem:[#allocation3 + $0x48] sm:$0xff]  ;;  %v783_v33 = vpack.c.bf16 %v268_v28, %v267_v26 }
  0x86   :  { %748 = vmatpush3.bf16.msra.mxu0 %v747_v13  ;;  %v1243_v31 = vld [vmem:[#allocation3 + $0x40] sm:$0xff]  ;;  %221 = vperm.xlu0 %815, %v218_v29   ;;  %v269_v35 = vld [vmem:[#allocation8 + $0x50] sm:$0xff]  ;;  %v272_v42 = vld [vmem:[#allocation8 + $0x68] sm:$0xff]  ;;  %p981_p4 = pnand %p980_p3, %p974_p0 }
  0x87   :  { %749 = vmatprep.subr.bf16.mxu0 %v1060_v0  ;;  %235 = vperm.xlu1 %816, %v232_v30   ;;  %v756_v34 = vpack.c.bf16 %v1245_v32, %v1243_v31  ;;  %v270_v36 = vld [vmem:[#allocation8 + $0x58] sm:$0xff]  ;;  %v1250_v37 = vld [vmem:[#allocation3 + $0x50] sm:$0xff]  ;;  %v271_v41 = vld [vmem:[#allocation8 + $0x60] sm:$0xff] }
  0x88   :  { %774 = vmatpush3.bf16.msra.mxu1 %v771_v14  ;;  %v1252_v38 = vld [vmem:[#allocation3 + $0x58] sm:$0xff]  ;;  %v787_v39 = vpack.c.bf16 %v270_v36, %v269_v35  ;;  %v1257_v43 = vld [vmem:[#allocation3 + $0x60] sm:$0xff]  ;;  %v1259_v44 = vld [vmem:[#allocation3 + $0x68] sm:$0xff]  ;;  %v791_v45 = vpack.c.bf16 %v272_v42, %v271_v41 }
  0x89   :  { %776 = vmatprep.subr.bf16.mxu1 %v775_v19  ;;  %v759_v40 = vpack.c.bf16 %v1252_v38, %v1250_v37  ;;  %v762_v46 = vpack.c.bf16 %v1259_v44, %v1257_v43  ;;  %v273_v47 = vld [vmem:[#allocation8 + $0x70] sm:$0xff]  ;;  %v274_v48 = vld [vmem:[#allocation8 + $0x78] sm:$0xff]  ;;  %v217_v42 = vld [vmem:[#allocation9] sm:$0xff] }
  0x8a   :  { %751 = vmatpush3.bf16.msra.mxu0 %v750_v20  ;;  %v1264_v49 = vld [vmem:[#allocation3 + $0x70] sm:$0xff]  ;;  %v1266_v50 = vld [vmem:[#allocation3 + $0x78] sm:$0xff]  ;;  %v795_v51 = vpack.c.bf16 %v274_v48, %v273_v47  ;;  %v120_v53 = vld [vmem:[#allocation6] sm:$0x1] }
  0x8b   :  { %752 = vmatprep.subr.bf16.mxu0 %v1060_v0  ;;  %v765_v52 = vpack.c.bf16 %v1266_v50, %v1264_v49 }
  0x8c   :  { %778 = vmatpush3.bf16.msra.mxu1 %v775_v19 }
  0x8d   :  { %780 = vmatprep.subr.bf16.mxu1 %v779_v25 }
  0x8e   :  { %754 = vmatpush3.bf16.msra.mxu0 %v753_v27  ;;  %v224_v27 = vlaneseq }
  0x8f   :  { %755 = vmatprep.subr.bf16.mxu0 %v1060_v0 }
  0x90   :  { %782 = vmatpush3.bf16.msra.mxu1 %v779_v25  ;;  %v225_v29 = vshrl.u32 %v224_v27, 7 }
  0x91   :  { %784 = vmatprep.subr.bf16.mxu1 %v783_v33 }
  0x92   :  { %757 = vmatpush3.bf16.msra.mxu0 %v756_v34  ;;  %v226_v34 = vsub.s32 0, %v225_v29 }
  0x93   :  { %758 = vmatprep.subr.bf16.mxu0 %v1060_v0 }
  0x94   :  { %786 = vmatpush3.bf16.msra.mxu1 %v783_v33 }
  0x95   :  { %788 = vmatprep.subr.bf16.mxu1 %v787_v39 }
  0x96   :  { %760 = vmatpush3.bf16.msra.mxu0 %v759_v40 }
  0x97   :  { %761 = vmatprep.subr.bf16.mxu0 %v1060_v0 }
  0x98   :  { %790 = vmatpush3.bf16.msra.mxu1 %v787_v39 }
  0x99   :  { %792 = vmatprep.subr.bf16.mxu1 %v791_v45 }
  0x9a   :  { %763 = vmatpush3.bf16.msra.mxu0 %v762_v46 }
  0x9b   :  { %764 = vmatprep.subr.bf16.mxu0 %v1060_v0 }
  0x9c   :  { %794 = vmatpush3.bf16.msra.mxu1 %v791_v45  ;;  %v231_v45 = vld [vmem:[#allocation11] sm:$0xff] }
  0x9d   :  { %796 = vmatprep.subr.bf16.mxu1 %v795_v51 }
  0x9e   :  { %766 = vmatpush3.bf16.msra.mxu0 %v765_v52 }
  0xa0   :  { %798 = vmatpush3.bf16.msra.mxu1 %v795_v51 }
  0xa1   :  { %685 = vmatmul.mubr.f32.vlgmr.msra.gmra.mrb[0].mxu0 %v120_v53 }
  0xa3   :  { %720 = vmatmul.mubr.f32.vlgmr.msra.gmra.mrb[0].mxu1 %v1217_v4 }
  0xa4   :  { %722 = vmatprep.mubr.f32.mxu1 %v1221_v8 }
  0xa7   :  { %723 = vmatmul.mubr.f32.gmra.mrb[2].mxu1 %v1223_v9 }
  0xa8   :  { %725 = vmatprep.mubr.f32.mxu1 %v1229_v17 }
  0xab   :  { %726 = vmatmul.mubr.f32.gmra.mrb[4].mxu1 %v1231_v18 }
  0xac   :  { %728 = vmatprep.mubr.f32.mxu1 %v1236_v23 }
  0xaf   :  { %729 = vmatmul.mubr.f32.gmra.mrb[6].mxu1 %v1238_v24 }
  0xb0   :  { %731 = vmatprep.mubr.f32.mxu1 %v1243_v31 }
  0xb3   :  { %732 = vmatmul.mubr.f32.gmra.mrb[8].mxu1 %v1245_v32 }
  0xb4   :  { %734 = vmatprep.mubr.f32.mxu1 %v1250_v37 }
  0xb7   :  { %735 = vmatmul.mubr.f32.gmra.mrb[10].mxu1 %v1252_v38 }
  0xb8   :  { %737 = vmatprep.mubr.f32.mxu1 %v1257_v43 }
  0xbb   :  { %738 = vmatmul.mubr.f32.gmra.mrb[12].mxu1 %v1259_v44 }
  0xbc   :  { %740 = vmatprep.mubr.f32.mxu1 %v1264_v49 }
  0xbf   :  { %741 = vmatmul.mubr.f32.gmra.mrb[14].mxu1 %v1266_v50 }
 0x105   :  { %v222_v20 = vpop.permute.xlu0 %221 }
 0x106   :  { %v236_v14 = vpop.permute.xlu1 %235 }
 0x174   :  { %v203_v54 = vpop.f32.mrb[0].mxu0 }
 0x175   :  { %v207_v55 = vmul.f32 %v203_v54, %v120_v53  ;;  %v686_v56 = vpop.f32.mrb[1].mxu0 }
 0x176   :  { %v721_v57 = vpop.f32.mrb[0].mxu1 }
 0x177   :  { %v341_v58 = vpop.f32.mrb[1].mxu1  ;;  %428 = vperm.xlu1 %816, %v721_v57   ;;  %v209_v59 = vsel %vm208_vm1, %v207_v55, 0.0 }
 0x178   :  { %210 = vadd.xlane.f32.xlu0 %v209_v59 }
 0x17a   :  { %v724_v60 = vpop.f32.mrb[2].mxu1 }
 0x17b   :  { %423 = vperm.xlu1 %816, %v341_v58   ;;  %v351_v61 = vpop.f32.mrb[3].mxu1 }
 0x17e   :  { %v727_v62 = vpop.f32.mrb[4].mxu1 }
 0x17f   :  { %438 = vperm.xlu1 %816, %v724_v60   ;;  %v361_v63 = vpop.f32.mrb[5].mxu1 }
 0x182   :  { %v730_v0 = vpop.f32.mrb[6].mxu1 }
 0x183   :  { %433 = vperm.xlu1 %816, %v351_v61   ;;  %v371_v1 = vpop.f32.mrb[7].mxu1 }
 0x186   :  { %v733_v2 = vpop.f32.mrb[8].mxu1 }
 0x187   :  { %448 = vperm.xlu1 %816, %v727_v62   ;;  %v381_v5 = vpop.f32.mrb[9].mxu1 }
 0x18a   :  { %v736_v6 = vpop.f32.mrb[10].mxu1 }
 0x18b   :  { %443 = vperm.xlu1 %816, %v361_v63   ;;  %v391_v7 = vpop.f32.mrb[11].mxu1 }
 0x18e   :  { %478 = vperm.xlu0 %815, %v736_v6   ;;  %v739_v10 = vpop.f32.mrb[12].mxu1 }
 0x18f   :  { %458 = vperm.xlu1 %816, %v730_v0   ;;  %v401_v11 = vpop.f32.mrb[13].mxu1 }
 0x192   :  { %488 = vperm.xlu0 %815, %v739_v10   ;;  %v742_v12 = vpop.f32.mrb[14].mxu1 }
 0x193   :  { %453 = vperm.xlu1 %816, %v371_v1   ;;  %v411_v13 = vpop.f32.mrb[15].mxu1 }
 0x196   :  { %498 = vperm.xlu0 %815, %v742_v12  }
 0x197   :  { %468 = vperm.xlu1 %816, %v733_v2  }
 0x19b   :  { %463 = vperm.xlu1 %816, %v381_v5  }
 0x19f   :  { %473 = vperm.xlu1 %816, %v391_v7  }
 0x1a3   :  { %483 = vperm.xlu1 %816, %v401_v11  }
 0x1a7   :  { %493 = vperm.xlu1 %816, %v411_v13  }
 0x1f6   :  { %v1286_v15 = vpop.permute.xlu1 %428 }
 0x1fa   :  { %v1288_v16 = vpop.permute.xlu1 %423 }
 0x1fe   :  { %v1290_v19 = vpop.permute.xlu1 %438 }
 0x202   :  { %v1292_v21 = vpop.permute.xlu1 %433 }
 0x205   :  { %v211_v22 = vpop.xlane.xlu0 %210 }
 0x206   :  { %v1294_v25 = vpop.permute.xlu1 %448  ;;  %v212_v26 = vadd.f32 1.0, %v211_v22 }
 0x208   :  { %817 = vrcp.f32 %v212_v26 }
 0x20a   :  { %v444_v28 = vpop.permute.xlu1 %443 }
 0x20d   :  { %v479_v33 = vpop.permute.xlu0 %478 }
 0x20e   :  { %v459_v30 = vpop.permute.xlu1 %458 }
 0x211   :  { %v489_v46 = vpop.permute.xlu0 %488 }
 0x212   :  { %v818_v35 = vpop.eup %817  ;;  %v454_v36 = vpop.permute.xlu1 %453 }
 0x213   :  { %v215_v39 = vmul.f32 %v818_v35, %v203_v54 }
 0x215   :  { %216 = vst [vmem:[#allocation2] sm:$0x1] %v215_v39  ;;  %v227_v40 = vrot.slane %v215_v39, %v226_v34 }
 0x216   :  { %v469_v41 = vpop.permute.xlu1 %468 }
 0x217   :  { %v228_v47 = vmul.f32 %v227_v40, %v222_v20  ;;  %v238_v48 = vmul.f32 %v236_v14, %v227_v40 }
 0x219   :  { %v229_v51 = vsub.f32 %v217_v42, %v228_v47  ;;  %v239_v52 = vsub.f32 %v231_v45, %v238_v48 }
 0x21a   :  { %v464_v53 = vpop.permute.xlu1 %463 }
 0x21b   :  { %230 = vst [vmem:[#allocation16] sm:$0xff] %v229_v51  ;;  %240 = vst [vmem:[#allocation18] sm:$0xff] %v239_v52 }
 0x21c   :  { %v1298_v54 = vld [vmem:[#allocation2] ss:$0 sm:$0xff] }
 0x21d   :  { %984 = shalt.err (!%p981_p4)
}
 0x21e   :  { %s985_s29 = scalar_lea.hbm %s1389_s8, 128 }
 0x21f   :  { %p986_p5 = scmp.ne.s32.totalorder %s1389_s8, %s985_s29  ;;  %p989_p6 = scmp.lt.u32.totalorder %s985_s29, %s1389_s8 }
 0x221   :  { %p991_p7 = pnand %p989_p6, %p986_p5 }
 0x223   :  { %994 = shalt.err (!%p991_p7)
}
 0x224   :  { %576 = dma.vmem_to_hbm [thread:$0]  %s574_s0, 128, %s1389_s8, [#allocation17]   ;;  %v511_v55 = vmul.f32 %v1298_v54, %v444_v28  ;;  %v514_v56 = vmul.f32 %v1298_v54, %v459_v30  ;;  %v518_v57 = vmul.f32 %v1298_v54, %v479_v33  ;;  %v513_v58 = vmul.f32 %v1298_v54, %v454_v36  ;;  %v499_v59 = vpop.permute.xlu0 %498 }
 0x225   :  { %s995_s15 = scalar_lea.vmem %s1296_s25, 128  ;;  %p1000_p9 = scmp.lt.s32.totalorder %s1296_s25, %s1296_s25 }
 0x226   :  { %p996_p8 = scmp.ne.s32.totalorder %s1296_s25, %s995_s15  ;;  %p1001_p10 = scmp.lt.s32.totalorder %s995_s15, %s995_s15 }
 0x228   :  { %p1002_p11 = por %p1001_p10, %p1000_p9 }
 0x22a   :  { %p1003_p12 = pnand %p1002_p11, %p996_p8 }
 0x22c   :  { %1006 = shalt.err (!%p1003_p12)
}
 0x22d   :  { %s1007_s8 = scalar_lea.hbm %s1390_s9, 128 }
 0x22e   :  { %p1008_p13 = scmp.ne.s32.totalorder %s1390_s9, %s1007_s8  ;;  %p1011_p0 = scmp.lt.u32.totalorder %s1007_s8, %s1390_s9 }
 0x230   :  { %p1013_p1 = pnand %p1011_p0, %p1008_p13 }
 0x232   :  { %1016 = shalt.err (!%p1013_p1)
}
 0x233   :  { %586 = dma.vmem_to_hbm [thread:$0]  %s1296_s25, 128, %s1390_s9, [#allocation17]   ;;  %v520_v60 = vmul.f32 %v1298_v54, %v489_v46  ;;  %v516_v61 = vmul.f32 %v1298_v54, %v469_v41  ;;  %v522_v62 = vmul.f32 %v1298_v54, %v499_v59  ;;  %v515_v63 = vmul.f32 %v1298_v54, %v464_v53  ;;  %v474_v0 = vpop.permute.xlu1 %473 }
 0x234   :  { %v527_v1 = vsub.f32 %v1229_v17, %v511_v55  ;;  %v530_v2 = vsub.f32 %v1238_v24, %v514_v56  ;;  %v534_v5 = vsub.f32 %v1252_v38, %v518_v57  ;;  %v529_v6 = vsub.f32 %v1236_v23, %v513_v58  ;;  %s1066_s9 = smov [#allocation15]  }
 0x235   :  { %v536_v7 = vsub.f32 %v1259_v44, %v520_v60  ;;  %v532_v10 = vsub.f32 %v1245_v32, %v516_v61  ;;  %v538_v11 = vsub.f32 %v1266_v50, %v522_v62  ;;  %v531_v12 = vsub.f32 %v1243_v31, %v515_v63  ;;  %s560_s24 = sshll.u32 %s1066_s9, 4  ;;  %s561_s24 = int_to_ptr.vmem [resolvable:$true] %s560_s24 }
 0x236   :  { %543 = vst [vmem:[#allocation15 + $0x20] sm:$0xff] %v527_v1  ;;  %546 = vst [vmem:[#allocation15 + $0x38] sm:$0xff] %v530_v2  ;;  %v517_v17 = vmul.f32 %v1298_v54, %v474_v0  ;;  %v507_v24 = vmul.f32 %v1298_v54, %v1288_v16  ;;  %v508_v23 = vmul.f32 %v1298_v54, %v1286_v15  ;;  %s1017_s4 = scalar_lea.vmem %s561_s24, 2048  ;;  %p1022_p3 = scmp.lt.s32.totalorder %s561_s24, %s561_s24 }
 0x237   :  { %550 = vst [vmem:[#allocation15 + $0x58] sm:$0xff] %v534_v5  ;;  %545 = vst [vmem:[#allocation15 + $0x30] sm:$0xff] %v529_v6  ;;  %v509_v38 = vmul.f32 %v1298_v54, %v1292_v21  ;;  %v484_v31 = vpop.permute.xlu1 %483  ;;  %v510_v32 = vmul.f32 %v1298_v54, %v1290_v19  ;;  %v512_v44 = vmul.f32 %v1298_v54, %v1294_v25  ;;  %p1018_p2 = scmp.ne.s32.totalorder %s561_s24, %s1017_s4  ;;  %p1023_p4 = scmp.lt.s32.totalorder %s1017_s4, %s1017_s4 }
 0x238   :  { %552 = vst [vmem:[#allocation15 + $0x68] sm:$0xff] %v536_v7  ;;  %548 = vst [vmem:[#allocation15 + $0x48] sm:$0xff] %v532_v10  ;;  %v533_v50 = vsub.f32 %v1250_v37, %v517_v17  ;;  %v519_v13 = vmul.f32 %v1298_v54, %v484_v31  ;;  %v523_v14 = vsub.f32 %v1215_v3, %v507_v24 }
 0x239   :  { %554 = vst [vmem:[#allocation15 + $0x78] sm:$0xff] %v538_v11  ;;  %547 = vst [vmem:[#allocation15 + $0x40] sm:$0xff] %v531_v12  ;;  %v524_v15 = vsub.f32 %v1217_v4, %v508_v23  ;;  %v525_v16 = vsub.f32 %v1221_v8, %v509_v38  ;;  %v526_v20 = vsub.f32 %v1223_v9, %v510_v32  ;;  %p1024_p5 = por %p1023_p4, %p1022_p3 }
 0x23a   :  { %v528_v21 = vsub.f32 %v1231_v18, %v512_v44  ;;  %549 = vst [vmem:[#allocation15 + $0x50] sm:$0xff] %v533_v50  ;;  %v535_v19 = vsub.f32 %v1257_v43, %v519_v13  ;;  %539 = vst [vmem:[#allocation15] sm:$0xff] %v523_v14 }
 0x23b   :  { %540 = vst [vmem:[#allocation15 + $0x8] sm:$0xff] %v524_v15  ;;  %v494_v22 = vpop.permute.xlu1 %493  ;;  %541 = vst [vmem:[#allocation15 + $0x10] sm:$0xff] %v525_v16  ;;  %p1025_p6 = pnand %p1024_p5, %p1018_p2 }
 0x23c   :  { %542 = vst [vmem:[#allocation15 + $0x18] sm:$0xff] %v526_v20  ;;  %544 = vst [vmem:[#allocation15 + $0x28] sm:$0xff] %v528_v21  ;;  %v521_v3 = vmul.f32 %v1298_v54, %v494_v22 }
 0x23d   :  { %551 = vst [vmem:[#allocation15 + $0x60] sm:$0xff] %v535_v19 }
 0x23e   :  { %v537_v4 = vsub.f32 %v1264_v49, %v521_v3 }
 0x240   :  { %553 = vst [vmem:[#allocation15 + $0x70] sm:$0xff] %v537_v4 }
 0x241   :  { %1028 = shalt.err (!%p1025_p6)
}
 0x242   :  { %s1029_s0 = scalar_lea.hbm %s1388_s7, 2048 }
 0x243   :  { %p1030_p7 = scmp.ne.s32.totalorder %s1388_s7, %s1029_s0  ;;  %p1033_p8 = scmp.lt.u32.totalorder %s1029_s0, %s1388_s7 }
 0x245   :  { %p1035_p9 = pnand %p1033_p8, %p1030_p7 }
 0x247   :  { %1038 = shalt.err (!%p1035_p9)
}
 0x248   :  { %566 = dma.vmem_to_hbm [thread:$0]  %s561_s24, 2048, %s1388_s7, [#allocation5], %s1055_s5, %s1055_s5, %s1056_s10  }
 0x249   :  { %1047 = dma.done.wait [#allocation5], 2048  }
 0x24a   :  { %1048 = vsyncadd [#allocation5], 4294965248 }
 0x24b   :  { %1049 = dma.done.wait [#allocation17], 256  }
 0x24c   :  { %1050 = vsyncadd [#allocation17], 4294967040 }
 0x24d   :  { %596 = vsyncpa [#allocation4], 1 }
 0x24e   :  { %597 = vsyncpa [#allocation7], 1 }
 0x24f   :  { %598 = vsyncpa [#allocation10], 1 }
 0x250   :  { %599 = vsyncpa [#allocation13], 1 }
 0x251   :  { %600 = vsyncpa [#allocation5], 1 }
 0x252   :  { %601 = vsyncpa [#allocation17], 1 }

</bundles_post_ra>
